<compile_context>
chip_gen: v6e
topology: v6e:2x2x1
jax: 0.10.0
libtpu: 0.0.40
codegen_flags: <defaults>
</compile_context>

<pallas_src>
import functools

import numpy as np
import jax
import jax.numpy as jnp
from jax import lax
from jax.experimental import pallas as pl
from jax.experimental.pallas import tpu as pltpu


def _round_up(x, m):
    return (x + m - 1) // m * m


# --------------------------------------------------------------------------
# Kernel 1: per-sample max-softmax confidence and accuracy, lane-dense (1, N).
# Inputs are (C, TL) logits (classes on sublanes) and (1, TL) labels.
# --------------------------------------------------------------------------
def _conf_acc_kernel(logits_ref, labels_ref, conf_ref, acc_ref, *, n_valid, tl):
    j = pl.program_id(0)
    logits = logits_ref[...]                         # (C, TL) f32
    labels = labels_ref[...]                         # (1, TL) i32
    c = logits.shape[0]

    col_max = jnp.max(logits, axis=0, keepdims=True)             # (1, TL)
    e = jnp.exp(logits - col_max)                                # (C, TL)
    denom = jnp.sum(e, axis=0, keepdims=True)                    # (1, TL)
    # max softmax prob == exp(max - max) / denom == 1 / denom (exact divide).
    conf = 1.0 / denom                                           # (1, TL)

    cls_iota = lax.broadcasted_iota(jnp.int32, logits.shape, 0)  # (C, TL)
    pred = jnp.min(jnp.where(logits == col_max, cls_iota, c),
                   axis=0, keepdims=True)                        # (1, TL) argmax (first tie)
    acc = (pred == labels).astype(jnp.float32)                   # (1, TL)

    gcol = j * tl + lax.broadcasted_iota(jnp.int32, conf.shape, 1)
    valid = gcol < n_valid
    # Padded samples: confidence 2.0 (> any real softmax prob) so they sort
    # strictly after every real sample and never land in a valid bin.
    conf_ref[...] = jnp.where(valid, conf, 2.0)
    acc_ref[...] = jnp.where(valid, acc, 0.0)


# --------------------------------------------------------------------------
# Kernel 2: stable ascending rank of each confidence (sort-free).
# Grid = (i-tiles [parallel], j-tiles [arbitrary, innermost reduction]).
# ci: (1, TI) lane-dense; cj: (TJ, 1) sublane column (wrapper-side reshape).
# Accumulator is a lane-dense (1, TI) int32 VMEM scratch.
# --------------------------------------------------------------------------
def _rank_kernel(conf_row_ref, conf_col_ref, rank_ref, racc_ref, *, ti, tj):
    i = pl.program_id(0)
    j = pl.program_id(1)

    @pl.when(j == 0)
    def _():
        racc_ref[...] = jnp.zeros_like(racc_ref)

    ci = conf_row_ref[...]                                        # (1, TI)
    cj = conf_col_ref[...]                                        # (TJ, 1)

    gi = i * ti + lax.broadcasted_iota(jnp.int32, (1, ti), 1)     # (1, TI)
    gj = j * tj + lax.broadcasted_iota(jnp.int32, (tj, 1), 0)     # (TJ, 1)

    less = cj < ci                                                # (TJ, TI)
    tie = (cj == ci) & (gj < gi)                                  # stable tie-break
    racc_ref[...] += jnp.sum((less | tie).astype(jnp.int32),
                             axis=0, keepdims=True)               # (1, TI) int32

    @pl.when(j == pl.num_programs(1) - 1)
    def _():
        rank_ref[...] = racc_ref[...]


# --------------------------------------------------------------------------
# Kernel 3: integer-binned per-bin conf/acc sums -> ECE / MCE.
# Grid iterates lane-tiles of N ("arbitrary"); (NBP, 1) f32 accumulators.
# --------------------------------------------------------------------------
def _bin_kernel(rank_ref, conf_ref, acc_ref, out_ref, csum_ref, asum_ref, *,
                n_bins, nbp, bin_size):
    j = pl.program_id(0)

    @pl.when(j == 0)
    def _():
        csum_ref[...] = jnp.zeros_like(csum_ref)
        asum_ref[...] = jnp.zeros_like(asum_ref)

    rank = rank_ref[...]                                          # (1, TL) i32
    conf = conf_ref[...]                                          # (1, TL) f32
    acc = acc_ref[...]                                            # (1, TL) f32

    # Integer bin boundaries k*bin_size (no float compares, no captured arrays).
    lows = bin_size * lax.broadcasted_iota(jnp.int32, (nbp, 1), 0)   # (NBP, 1)
    in_bin = (rank >= lows) & (rank < lows + bin_size)               # (NBP, TL)
    csum_ref[...] += jnp.sum(jnp.where(in_bin, conf, 0.0), axis=1, keepdims=True)
    asum_ref[...] += jnp.sum(jnp.where(in_bin, acc, 0.0), axis=1, keepdims=True)

    @pl.when(j == pl.num_programs(0) - 1)
    def _():
        ce = jnp.abs(csum_ref[...] - asum_ref[...]) / float(bin_size)   # (NBP, 1)
        valid = lax.broadcasted_iota(jnp.int32, (nbp, 1), 0) < n_bins
        ce = jnp.where(valid, ce, 0.0)
        ece = jnp.sum(ce, keepdims=True) / float(n_bins)                # (1, 1)
        mce = jnp.max(ce, keepdims=True)                                # (1, 1)
        lane = lax.broadcasted_iota(jnp.int32, (1, 2), 1)
        out_ref[...] = jnp.where(lane == 0, ece, mce)                   # [ECE, MCE]


# --------------------------------------------------------------------------
# Wrapper
# --------------------------------------------------------------------------
@functools.partial(jax.jit, static_argnames=("n_bins",))
def ce_loss_pallas(logits, labels, n_bins=20):
    """Pallas port of CELoss.forward. Returns (ece, mce) as float32 scalars."""
    N, C = logits.shape
    if N % n_bins != 0:
        # TODO(synk): non-divisible N uses truncated-linspace bin edges in the
        # PyTorch module; only the exact equal-count case is implemented here.
        raise ValueError("ce_loss_pallas requires len(labels) % n_bins == 0")
    bin_size = N // n_bins

    # Lane tiling: pad N up so every tile is lane-aligned (multiple of 128).
    if N > 512:
        NP = _round_up(N, 512)
        TI, TJ, TL = 256, 512, 512          # i-tiles small enough to parallelize
    else:
        NP = _round_up(N, 128)
        TI = TJ = TL = NP                   # single tile per axis

    # Lane-dense input prep (wrapper-side transpose + pad, cheap XLA ops).
    logits_t = jnp.transpose(logits.astype(jnp.float32))          # (C, N)
    labels_i = labels.astype(jnp.int32).reshape(1, N)
    if NP > N:
        logits_t = jnp.pad(logits_t, ((0, 0), (0, NP - N)))
        labels_i = jnp.pad(labels_i, ((0, 0), (0, NP - N)), constant_values=-1)

    nbp = max(8, _round_up(n_bins, 8))
    vmem_cap = 32 * 1024 * 1024   # safe on v5e/v6e (128 MiB) and v7x (64 MiB)

    # ---- phase 1: confidence / accuracy ------------------------------------
    conf, acc = pl.pallas_call(
        functools.partial(_conf_acc_kernel, n_valid=N, tl=TL),
        out_shape=(jax.ShapeDtypeStruct((1, NP), jnp.float32),
                   jax.ShapeDtypeStruct((1, NP), jnp.float32)),
        grid=(NP // TL,),
        in_specs=[pl.BlockSpec((C, TL), lambda j: (0, j)),
                  pl.BlockSpec((1, TL), lambda j: (0, j))],
        out_specs=(pl.BlockSpec((1, TL), lambda j: (0, j)),
                   pl.BlockSpec((1, TL), lambda j: (0, j))),
        compiler_params=pltpu.CompilerParams(
            dimension_semantics=("parallel",),
            vmem_limit_bytes=vmem_cap),
    )(logits_t, labels_i)

    # Column view of conf for the j ("compared against") side of the rank.
    conf_col = conf.reshape(NP, 1)

    # ---- phase 2: stable ranks (tiled O(N^2)) ------------------------------
    rank = pl.pallas_call(
        functools.partial(_rank_kernel, ti=TI, tj=TJ),
        out_shape=jax.ShapeDtypeStruct((1, NP), jnp.int32),
        grid=(NP // TI, NP // TJ),
        in_specs=[pl.BlockSpec((1, TI), lambda i, j: (0, i)),
                  pl.BlockSpec((TJ, 1), lambda i, j: (j, 0))],
        out_specs=pl.BlockSpec((1, TI), lambda i, j: (0, i)),
        scratch_shapes=[pltpu.VMEM((1, TI), jnp.int32)],
        compiler_params=pltpu.CompilerParams(
            dimension_semantics=("parallel", "arbitrary"),
            vmem_limit_bytes=vmem_cap),
    )(conf, conf_col)

    # ---- phase 3: per-bin sums -> ECE / MCE --------------------------------
    out = pl.pallas_call(
        functools.partial(_bin_kernel, n_bins=n_bins, nbp=nbp, bin_size=bin_size),
        out_shape=jax.ShapeDtypeStruct((1, 2), jnp.float32),
        grid=(NP // TL,),
        in_specs=[pl.BlockSpec((1, TL), lambda j: (0, j)),
                  pl.BlockSpec((1, TL), lambda j: (0, j)),
                  pl.BlockSpec((1, TL), lambda j: (0, j))],
        out_specs=pl.BlockSpec((1, 2), lambda j: (0, 0)),
        scratch_shapes=[pltpu.VMEM((nbp, 1), jnp.float32),
                        pltpu.VMEM((nbp, 1), jnp.float32)],
        compiler_params=pltpu.CompilerParams(
            dimension_semantics=("arbitrary",),
            vmem_limit_bytes=vmem_cap),
    )(rank, conf, acc)

    return out[0, 0], out[0, 1]


# --------------------------------------------------------------------------
# Pure numpy reference mirroring the PyTorch module (sort-based).
# --------------------------------------------------------------------------
def ce_loss_ref(logits, labels, n_bins=20):
    logits = np.asarray(logits, np.float64)
    labels = np.asarray(labels)
    N = len(labels)
    bin_size = N // n_bins
    bin_lower = np.linspace(0, N - bin_size, n_bins).astype(int)
    bin_upper = bin_lower + bin_size
    sm = np.exp(logits - logits.max(1, keepdims=True))
    sm /= sm.sum(1, keepdims=True)
    conf = sm.max(1)
    pred = sm.argmax(1)
    acc = (pred == labels)
    order = np.argsort(conf, kind="stable")
    sc, sa = conf[order], acc[order]
    ece, mce = 0.0, 0.0
    for lo, up in zip(bin_lower, bin_upper):
        c = float(sc[lo:up].sum())
        a = float(sa[lo:up].sum())
        ce = abs(c - a) / bin_size
        ece += ce
        mce = max(mce, ce)
    return ece / n_bins, mce


if __name__ == "__main__":
    N, C, N_BINS = 80, 10, 20  # N divisible by n_bins, as the module implies
    key = jax.random.PRNGKey(0)
    k_logits, k_labels = jax.random.split(key)
    logits = jax.random.normal(k_logits, (N, C), dtype=jnp.float32) * 3.0
    labels = jax.random.randint(k_labels, (N,), 0, C, dtype=jnp.int32)

    ece, mce = ce_loss_pallas(logits, labels, n_bins=N_BINS)
    ece = jax.block_until_ready(ece)
    mce = jax.block_until_ready(mce)

    ece_ref, mce_ref = ce_loss_ref(np.asarray(logits), np.asarray(labels), n_bins=N_BINS)
    assert np.allclose(float(ece), ece_ref, atol=1e-4), (float(ece), ece_ref)
    assert np.allclose(float(mce), mce_ref, atol=1e-4), (float(mce), mce_ref)

    print("KERNEL_OK")
</pallas_src>

<mosaic_0001>
module attributes {stable_mosaic.version = 11 : i64} {
  func.func @_conf_acc_kernel(%arg0: i32, %arg1: memref<10x128xf32, #tpu.memory_space<vmem>>, %arg2: memref<1x128xi32, #tpu.memory_space<vmem>>, %arg3: memref<1x128xf32, #tpu.memory_space<vmem>>, %arg4: memref<1x128xf32, #tpu.memory_space<vmem>>) attributes {dimension_semantics = [#tpu.dimension_semantics<parallel>], iteration_bounds = array<i64: 1>, scalar_prefetch = 0 : i64, scratch_operands = 0 : i64, tpu.core_type = #tpu.core_type<tc>, window_params = [{transform_indices = @transform_0, window_bounds = array<i64: 10, 128>}, {transform_indices = @transform_1, window_bounds = array<i64: 1, 128>}, {transform_indices = @transform_2, window_bounds = array<i64: 1, 128>}, {transform_indices = @transform_3, window_bounds = array<i64: 1, 128>}]} {
    %c0 = arith.constant 0 : index
    %c0_0 = arith.constant 0 : index
    %0 = vector.load %arg1[%c0, %c0_0] : memref<10x128xf32, #tpu.memory_space<vmem>>, vector<10x128xf32>
    %c0_1 = arith.constant 0 : index
    %c0_2 = arith.constant 0 : index
    %1 = vector.load %arg2[%c0_1, %c0_2] : memref<1x128xi32, #tpu.memory_space<vmem>>, vector<1x128xi32>
    %cst = arith.constant dense<0xFF800000> : vector<128xf32>
    %2 = vector.multi_reduction <maximumf>, %0, %cst [0] : vector<10x128xf32> to vector<128xf32>
    %3 = vector.shape_cast %2 : vector<128xf32> to vector<1x128xf32>
    %4 = vector.broadcast %3 : vector<1x128xf32> to vector<10x128xf32>
    %5 = arith.subf %0, %4 : vector<10x128xf32>
    %6 = math.exp %5 : vector<10x128xf32>
    %cst_3 = arith.constant dense<0.000000e+00> : vector<128xf32>
    %7 = vector.multi_reduction <add>, %6, %cst_3 [0] : vector<10x128xf32> to vector<128xf32>
    %8 = vector.shape_cast %7 : vector<128xf32> to vector<1x128xf32>
    %cst_4 = arith.constant 1.000000e+00 : f32
    %9 = vector.broadcast %cst_4 : f32 to vector<1x128xf32>
    %10 = arith.divf %9, %8 : vector<1x128xf32>
    %11 = tpu.iota {dimensions = array<i32: 0>} : vector<10x128xi32>
    %12 = vector.broadcast %3 : vector<1x128xf32> to vector<10x128xf32>
    %13 = arith.cmpf oeq, %0, %12 : vector<10x128xf32>
    %c10_i32 = arith.constant 10 : i32
    %14 = vector.broadcast %c10_i32 : i32 to vector<10x128xi32>
    %15 = arith.select %13, %11, %14 : vector<10x128xi1>, vector<10x128xi32>
    %cst_5 = arith.constant dense<2147483647> : vector<128xi32>
    %16 = vector.multi_reduction <minsi>, %15, %cst_5 [0] : vector<10x128xi32> to vector<128xi32>
    %17 = vector.shape_cast %16 : vector<128xi32> to vector<1x128xi32>
    %18 = arith.cmpi eq, %17, %1 : vector<1x128xi32>
    %19 = arith.extui %18 : vector<1x128xi1> to vector<1x128xi32>
    %20 = arith.sitofp %19 : vector<1x128xi32> to vector<1x128xf32>
    %c128_i32 = arith.constant 128 : i32
    %21 = arith.muli %arg0, %c128_i32 : i32
    %22 = tpu.iota {dimensions = array<i32: 1>} : vector<1x128xi32>
    %23 = vector.broadcast %21 : i32 to vector<1x128xi32>
    %24 = arith.addi %23, %22 : vector<1x128xi32>
    %c80_i32 = arith.constant 80 : i32
    %25 = vector.broadcast %c80_i32 : i32 to vector<1x128xi32>
    %26 = arith.cmpi slt, %24, %25 : vector<1x128xi32>
    %cst_6 = arith.constant 2.000000e+00 : f32
    %27 = vector.broadcast %cst_6 : f32 to vector<1x128xf32>
    %28 = arith.select %26, %10, %27 : vector<1x128xi1>, vector<1x128xf32>
    %c0_7 = arith.constant 0 : index
    %c0_8 = arith.constant 0 : index
    %29 = vector.load %arg3[%c0_7, %c0_8] : memref<1x128xf32, #tpu.memory_space<vmem>>, vector<1x128xf32>
    tpu.vector_store %arg3[%c0_7, %c0_8], %28 {strides = array<i32>} : memref<1x128xf32, #tpu.memory_space<vmem>>, vector<1x128xf32>,
    %cst_9 = arith.constant 0.000000e+00 : f32
    %30 = vector.broadcast %cst_9 : f32 to vector<1x128xf32>
    %31 = arith.select %26, %20, %30 : vector<1x128xi1>, vector<1x128xf32>
    %c0_10 = arith.constant 0 : index
    %c0_11 = arith.constant 0 : index
    %32 = vector.load %arg4[%c0_10, %c0_11] : memref<1x128xf32, #tpu.memory_space<vmem>>, vector<1x128xf32>
    tpu.vector_store %arg4[%c0_10, %c0_11], %31 {strides = array<i32>} : memref<1x128xf32, #tpu.memory_space<vmem>>, vector<1x128xf32>,
    return
  }
  func.func @transform_0(%arg0: i32) -> (i32, i32) {
    %c0_i32 = arith.constant 0 : i32
    %c0_i32_0 = arith.constant 0 : i32
    return %c0_i32, %arg0 : i32, i32
  }
  func.func @transform_1(%arg0: i32) -> (i32, i32) {
    %c0_i32 = arith.constant 0 : i32
    %c0_i32_0 = arith.constant 0 : i32
    return %c0_i32, %arg0 : i32, i32
  }
  func.func @transform_2(%arg0: i32) -> (i32, i32) {
    %c0_i32 = arith.constant 0 : i32
    %c0_i32_0 = arith.constant 0 : i32
    return %c0_i32, %arg0 : i32, i32
  }
  func.func @transform_3(%arg0: i32) -> (i32, i32) {
    %c0_i32 = arith.constant 0 : i32
    %c0_i32_0 = arith.constant 0 : i32
    return %c0_i32, %arg0 : i32, i32
  }
}

module attributes {stable_mosaic.version = 11 : i64} {
  func.func @_bin_kernel(%arg0: i32, %arg1: memref<1x128xi32, #tpu.memory_space<vmem>>, %arg2: memref<1x128xf32, #tpu.memory_space<vmem>>, %arg3: memref<1x128xf32, #tpu.memory_space<vmem>>, %arg4: memref<1x2xf32, #tpu.memory_space<vmem>>, %arg5: memref<24x1xf32, #tpu.memory_space<vmem>>, %arg6: memref<24x1xf32, #tpu.memory_space<vmem>>) attributes {dimension_semantics = [#tpu.dimension_semantics<arbitrary>], iteration_bounds = array<i64: 1>, scalar_prefetch = 0 : i64, scratch_operands = 2 : i64, tpu.core_type = #tpu.core_type<tc>, window_params = [{transform_indices = @transform_0, window_bounds = array<i64: 1, 128>}, {transform_indices = @transform_1, window_bounds = array<i64: 1, 128>}, {transform_indices = @transform_2, window_bounds = array<i64: 1, 128>}, {pipeline_mode = #tpu.pipeline_mode<synchronous>, transform_indices = @transform_3, window_bounds = array<i64: 1, 2>}]} {
    %c0_i32 = arith.constant 0 : i32
    %0 = arith.cmpi eq, %arg0, %c0_i32 : i32
    %1 = arith.extui %0 : i1 to i32
    %c0_i32_0 = arith.constant 0 : i32
    %2 = arith.cmpi ne, %1, %c0_i32_0 : i32
    scf.if %2 {
      %cst_20 = arith.constant 0.000000e+00 : f32
      %39 = vector.broadcast %cst_20 : f32 to vector<24x1xf32>
      %c0_21 = arith.constant 0 : index
      %c0_22 = arith.constant 0 : index
      %40 = vector.load %arg5[%c0_21, %c0_22] : memref<24x1xf32, #tpu.memory_space<vmem>>, vector<24x1xf32>
      tpu.vector_store %arg5[%c0_21, %c0_22], %39 {strides = array<i32>} : memref<24x1xf32, #tpu.memory_space<vmem>>, vector<24x1xf32>,
      %cst_23 = arith.constant 0.000000e+00 : f32
      %41 = vector.broadcast %cst_23 : f32 to vector<24x1xf32>
      %c0_24 = arith.constant 0 : index
      %c0_25 = arith.constant 0 : index
      %42 = vector.load %arg6[%c0_24, %c0_25] : memref<24x1xf32, #tpu.memory_space<vmem>>, vector<24x1xf32>
      tpu.vector_store %arg6[%c0_24, %c0_25], %41 {strides = array<i32>} : memref<24x1xf32, #tpu.memory_space<vmem>>, vector<24x1xf32>,
    } else {
    }
    %c0 = arith.constant 0 : index
    %c0_1 = arith.constant 0 : index
    %3 = vector.load %arg1[%c0, %c0_1] : memref<1x128xi32, #tpu.memory_space<vmem>>, vector<1x128xi32>
    %c0_2 = arith.constant 0 : index
    %c0_3 = arith.constant 0 : index
    %4 = vector.load %arg2[%c0_2, %c0_3] : memref<1x128xf32, #tpu.memory_space<vmem>>, vector<1x128xf32>
    %c0_4 = arith.constant 0 : index
    %c0_5 = arith.constant 0 : index
    %5 = vector.load %arg3[%c0_4, %c0_5] : memref<1x128xf32, #tpu.memory_space<vmem>>, vector<1x128xf32>
    %6 = tpu.iota {dimensions = array<i32: 0>} : vector<24x1xi32>
    %c4_i32 = arith.constant 4 : i32
    %7 = vector.broadcast %c4_i32 : i32 to vector<24x1xi32>
    %8 = arith.muli %7, %6 : vector<24x1xi32>
    %9 = vector.broadcast %3 : vector<1x128xi32> to vector<24x128xi32>
    %10 = vector.broadcast %8 : vector<24x1xi32> to vector<24x128xi32>
    %11 = arith.cmpi sge, %9, %10 : vector<24x128xi32>
    %c4_i32_6 = arith.constant 4 : i32
    %12 = vector.broadcast %c4_i32_6 : i32 to vector<24x1xi32>
    %13 = arith.addi %8, %12 : vector<24x1xi32>
    %14 = vector.broadcast %3 : vector<1x128xi32> to vector<24x128xi32>
    %15 = vector.broadcast %13 : vector<24x1xi32> to vector<24x128xi32>
    %16 = arith.cmpi slt, %14, %15 : vector<24x128xi32>
    %17 = arith.andi %11, %16 : vector<24x128xi1>
    %c0_7 = arith.constant 0 : index
    %c0_8 = arith.constant 0 : index
    %18 = vector.load %arg5[%c0_7, %c0_8] : memref<24x1xf32, #tpu.memory_space<vmem>>, vector<24x1xf32>
    %cst = arith.constant 0.000000e+00 : f32
    %19 = vector.shape_cast %4 : vector<1x128xf32> to vector<1x128xf32>
    %20 = vector.broadcast %19 : vector<1x128xf32> to vector<24x128xf32>
    %21 = vector.broadcast %cst : f32 to vector<24x128xf32>
    %22 = arith.select %17, %20, %21 : vector<24x128xi1>, vector<24x128xf32>
    %cst_9 = arith.constant dense<0.000000e+00> : vector<24xf32>
    %23 = vector.multi_reduction <add>, %22, %cst_9 [1] : vector<24x128xf32> to vector<24xf32>
    %24 = vector.shape_cast %23 : vector<24xf32> to vector<24x1xf32>
    %25 = arith.addf %18, %24 : vector<24x1xf32>
    %c0_10 = arith.constant 0 : index
    %c0_11 = arith.constant 0 : index
    %26 = vector.load %arg5[%c0_10, %c0_11] : memref<24x1xf32, #tpu.memory_space<vmem>>, vector<24x1xf32>
    tpu.vector_store %arg5[%c0_10, %c0_11], %25 {strides = array<i32>} : memref<24x1xf32, #tpu.memory_space<vmem>>, vector<24x1xf32>,
    %c0_12 = arith.constant 0 : index
    %c0_13 = arith.constant 0 : index
    %27 = vector.load %arg6[%c0_12, %c0_13] : memref<24x1xf32, #tpu.memory_space<vmem>>, vector<24x1xf32>
    %cst_14 = arith.constant 0.000000e+00 : f32
    %28 = vector.shape_cast %5 : vector<1x128xf32> to vector<1x128xf32>
    %29 = vector.broadcast %28 : vector<1x128xf32> to vector<24x128xf32>
    %30 = vector.broadcast %cst_14 : f32 to vector<24x128xf32>
    %31 = arith.select %17, %29, %30 : vector<24x128xi1>, vector<24x128xf32>
    %cst_15 = arith.constant dense<0.000000e+00> : vector<24xf32>
    %32 = vector.multi_reduction <add>, %31, %cst_15 [1] : vector<24x128xf32> to vector<24xf32>
    %33 = vector.shape_cast %32 : vector<24xf32> to vector<24x1xf32>
    %34 = arith.addf %27, %33 : vector<24x1xf32>
    %c0_16 = arith.constant 0 : index
    %c0_17 = arith.constant 0 : index
    %35 = vector.load %arg6[%c0_16, %c0_17] : memref<24x1xf32, #tpu.memory_space<vmem>>, vector<24x1xf32>
    tpu.vector_store %arg6[%c0_16, %c0_17], %34 {strides = array<i32>} : memref<24x1xf32, #tpu.memory_space<vmem>>, vector<24x1xf32>,
    %c0_i32_18 = arith.constant 0 : i32
    %36 = arith.cmpi eq, %arg0, %c0_i32_18 : i32
    %37 = arith.extui %36 : i1 to i32
    %c0_i32_19 = arith.constant 0 : i32
    %38 = arith.cmpi ne, %37, %c0_i32_19 : i32
    scf.if %38 {
      %c0_20 = arith.constant 0 : index
      %c0_21 = arith.constant 0 : index
      %39 = vector.load %arg5[%c0_20, %c0_21] : memref<24x1xf32, #tpu.memory_space<vmem>>, vector<24x1xf32>
      %c0_22 = arith.constant 0 : index
      %c0_23 = arith.constant 0 : index
      %40 = vector.load %arg6[%c0_22, %c0_23] : memref<24x1xf32, #tpu.memory_space<vmem>>, vector<24x1xf32>
      %41 = arith.subf %39, %40 : vector<24x1xf32>
      %42 = math.absf %41 : vector<24x1xf32>
      %cst_24 = arith.constant 4.000000e+00 : f32
      %43 = vector.broadcast %cst_24 : f32 to vector<24x1xf32>
      %44 = arith.divf %42, %43 : vector<24x1xf32>
      %45 = tpu.iota {dimensions = array<i32: 0>} : vector<24x1xi32>
      %c20_i32 = arith.constant 20 : i32
      %46 = vector.broadcast %c20_i32 : i32 to vector<24x1xi32>
      %47 = arith.cmpi slt, %45, %46 : vector<24x1xi32>
      %cst_25 = arith.constant 0.000000e+00 : f32
      %48 = vector.broadcast %cst_25 : f32 to vector<24x1xf32>
      %49 = arith.select %47, %44, %48 : vector<24x1xi1>, vector<24x1xf32>
      %50 = vector.shape_cast %49 : vector<24x1xf32> to vector<1x24x1xf32>
      %cst_26 = arith.constant dense<0.000000e+00> : vector<1xf32>
      %51 = vector.multi_reduction <add>, %50, %cst_26 [1, 2] : vector<1x24x1xf32> to vector<1xf32>
      %52 = vector.shape_cast %51 : vector<1xf32> to vector<1x1x1xf32>
      %53 = vector.extract %52[0, 0, 0] : f32 from vector<1x1x1xf32>
      %54 = vector.broadcast %53 : f32 to vector<1x1xf32>
      %cst_27 = arith.constant 2.000000e+01 : f32
      %55 = vector.broadcast %cst_27 : f32 to vector<1x1xf32>
      %56 = arith.divf %54, %55 : vector<1x1xf32>
      %57 = vector.shape_cast %49 : vector<24x1xf32> to vector<1x24x1xf32>
      %cst_28 = arith.constant dense<0xFF800000> : vector<1xf32>
      %58 = vector.multi_reduction <maximumf>, %57, %cst_28 [1, 2] : vector<1x24x1xf32> to vector<1xf32>
      %59 = vector.shape_cast %58 : vector<1xf32> to vector<1x1x1xf32>
      %60 = vector.extract %59[0, 0, 0] : f32 from vector<1x1x1xf32>
      %61 = vector.broadcast %60 : f32 to vector<1x1xf32>
      %62 = tpu.iota {dimensions = array<i32: 1>} : vector<1x2xi32>
      %c0_i32_29 = arith.constant 0 : i32
      %63 = vector.broadcast %c0_i32_29 : i32 to vector<1x2xi32>
      %64 = arith.cmpi eq, %62, %63 : vector<1x2xi32>
      %65 = vector.shape_cast %56 : vector<1x1xf32> to vector<1x1xf32>
      %66 = vector.broadcast %65 : vector<1x1xf32> to vector<1x2xf32>
      %67 = vector.shape_cast %61 : vector<1x1xf32> to vector<1x1xf32>
      %68 = vector.broadcast %67 : vector<1x1xf32> to vector<1x2xf32>
      %69 = arith.select %64, %66, %68 : vector<1x2xi1>, vector<1x2xf32>
      %c0_30 = arith.constant 0 : index
      %c0_31 = arith.constant 0 : index
      %70 = vector.load %arg4[%c0_30, %c0_31] : memref<1x2xf32, #tpu.memory_space<vmem>>, vector<1x2xf32>
      tpu.vector_store %arg4[%c0_30, %c0_31], %69 {strides = array<i32>} : memref<1x2xf32, #tpu.memory_space<vmem>>, vector<1x2xf32>,
    } else {
    }
    return
  }
  func.func @transform_0(%arg0: i32) -> (i32, i32) {
    %c0_i32 = arith.constant 0 : i32
    %c0_i32_0 = arith.constant 0 : i32
    return %c0_i32, %arg0 : i32, i32
  }
  func.func @transform_1(%arg0: i32) -> (i32, i32) {
    %c0_i32 = arith.constant 0 : i32
    %c0_i32_0 = arith.constant 0 : i32
    return %c0_i32, %arg0 : i32, i32
  }
  func.func @transform_2(%arg0: i32) -> (i32, i32) {
    %c0_i32 = arith.constant 0 : i32
    %c0_i32_0 = arith.constant 0 : i32
    return %c0_i32, %arg0 : i32, i32
  }
  func.func @transform_3(%arg0: i32) -> (i32, i32) {
    %c0_i32 = arith.constant 0 : i32
    %c0_i32_0 = arith.constant 0 : i32
    %c0_i32_1 = arith.constant 0 : i32
    return %c0_i32, %c0_i32_0 : i32, i32
  }
}

module attributes {stable_mosaic.version = 11 : i64} {
  func.func @_rank_kernel(%arg0: i32, %arg1: i32, %arg2: memref<1x128xf32, #tpu.memory_space<vmem>>, %arg3: memref<128x1xf32, #tpu.memory_space<vmem>>, %arg4: memref<1x128xi32, #tpu.memory_space<vmem>>, %arg5: memref<1x128xi32, #tpu.memory_space<vmem>>) attributes {dimension_semantics = [#tpu.dimension_semantics<parallel>, #tpu.dimension_semantics<arbitrary>], iteration_bounds = array<i64: 1, 1>, scalar_prefetch = 0 : i64, scratch_operands = 1 : i64, tpu.core_type = #tpu.core_type<tc>, window_params = [{transform_indices = @transform_0, window_bounds = array<i64: 1, 128>}, {transform_indices = @transform_1, window_bounds = array<i64: 128, 1>}, {transform_indices = @transform_2, window_bounds = array<i64: 1, 128>}]} {
    %c0_i32 = arith.constant 0 : i32
    %0 = arith.cmpi eq, %arg1, %c0_i32 : i32
    %1 = arith.extui %0 : i1 to i32
    %c0_i32_0 = arith.constant 0 : i32
    %2 = arith.cmpi ne, %1, %c0_i32_0 : i32
    scf.if %2 {
      %c0_i32_11 = arith.constant 0 : i32
      %33 = vector.broadcast %c0_i32_11 : i32 to vector<1x128xi32>
      %c0_12 = arith.constant 0 : index
      %c0_13 = arith.constant 0 : index
      %34 = vector.load %arg5[%c0_12, %c0_13] : memref<1x128xi32, #tpu.memory_space<vmem>>, vector<1x128xi32>
      tpu.vector_store %arg5[%c0_12, %c0_13], %33 {strides = array<i32>} : memref<1x128xi32, #tpu.memory_space<vmem>>, vector<1x128xi32>,
    } else {
    }
    %c0 = arith.constant 0 : index
    %c0_1 = arith.constant 0 : index
    %3 = vector.load %arg2[%c0, %c0_1] : memref<1x128xf32, #tpu.memory_space<vmem>>, vector<1x128xf32>
    %c0_2 = arith.constant 0 : index
    %c0_3 = arith.constant 0 : index
    %4 = vector.load %arg3[%c0_2, %c0_3] : memref<128x1xf32, #tpu.memory_space<vmem>>, vector<128x1xf32>
    %c128_i32 = arith.constant 128 : i32
    %5 = arith.muli %arg0, %c128_i32 : i32
    %6 = tpu.iota {dimensions = array<i32: 1>} : vector<1x128xi32>
    %7 = vector.broadcast %5 : i32 to vector<1x128xi32>
    %8 = arith.addi %7, %6 : vector<1x128xi32>
    %c128_i32_4 = arith.constant 128 : i32
    %9 = arith.muli %arg1, %c128_i32_4 : i32
    %10 = tpu.iota {dimensions = array<i32: 0>} : vector<128x1xi32>
    %11 = vector.broadcast %9 : i32 to vector<128x1xi32>
    %12 = arith.addi %11, %10 : vector<128x1xi32>
    %13 = vector.broadcast %4 : vector<128x1xf32> to vector<128x128xf32>
    %14 = vector.broadcast %3 : vector<1x128xf32> to vector<128x128xf32>
    %15 = arith.cmpf olt, %13, %14 : vector<128x128xf32>
    %16 = vector.broadcast %4 : vector<128x1xf32> to vector<128x128xf32>
    %17 = vector.broadcast %3 : vector<1x128xf32> to vector<128x128xf32>
    %18 = arith.cmpf oeq, %16, %17 : vector<128x128xf32>
    %19 = vector.broadcast %12 : vector<128x1xi32> to vector<128x128xi32>
    %20 = vector.broadcast %8 : vector<1x128xi32> to vector<128x128xi32>
    %21 = arith.cmpi slt, %19, %20 : vector<128x128xi32>
    %22 = arith.andi %18, %21 : vector<128x128xi1>
    %c0_5 = arith.constant 0 : index
    %c0_6 = arith.constant 0 : index
    %23 = vector.load %arg5[%c0_5, %c0_6] : memref<1x128xi32, #tpu.memory_space<vmem>>, vector<1x128xi32>
    %24 = arith.ori %15, %22 : vector<128x128xi1>
    %25 = arith.extui %24 : vector<128x128xi1> to vector<128x128xi32>
    %cst = arith.constant dense<0> : vector<128xi32>
    %26 = vector.multi_reduction <add>, %25, %cst [0] : vector<128x128xi32> to vector<128xi32>
    %27 = vector.shape_cast %26 : vector<128xi32> to vector<1x128xi32>
    %28 = arith.addi %23, %27 : vector<1x128xi32>
    %c0_7 = arith.constant 0 : index
    %c0_8 = arith.constant 0 : index
    %29 = vector.load %arg5[%c0_7, %c0_8] : memref<1x128xi32, #tpu.memory_space<vmem>>, vector<1x128xi32>
    tpu.vector_store %arg5[%c0_7, %c0_8], %28 {strides = array<i32>} : memref<1x128xi32, #tpu.memory_space<vmem>>, vector<1x128xi32>,
    %c0_i32_9 = arith.constant 0 : i32
    %30 = arith.cmpi eq, %arg1, %c0_i32_9 : i32
    %31 = arith.extui %30 : i1 to i32
    %c0_i32_10 = arith.constant 0 : i32
    %32 = arith.cmpi ne, %31, %c0_i32_10 : i32
    scf.if %32 {
      %c0_11 = arith.constant 0 : index
      %c0_12 = arith.constant 0 : index
      %33 = vector.load %arg5[%c0_11, %c0_12] : memref<1x128xi32, #tpu.memory_space<vmem>>, vector<1x128xi32>
      %c0_13 = arith.constant 0 : index
      %c0_14 = arith.constant 0 : index
      %34 = vector.load %arg4[%c0_13, %c0_14] : memref<1x128xi32, #tpu.memory_space<vmem>>, vector<1x128xi32>
      tpu.vector_store %arg4[%c0_13, %c0_14], %33 {strides = array<i32>} : memref<1x128xi32, #tpu.memory_space<vmem>>, vector<1x128xi32>,
    } else {
    }
    return
  }
  func.func @transform_0(%arg0: i32, %arg1: i32) -> (i32, i32) {
    %c0_i32 = arith.constant 0 : i32
    %c0_i32_0 = arith.constant 0 : i32
    return %c0_i32, %arg0 : i32, i32
  }
  func.func @transform_1(%arg0: i32, %arg1: i32) -> (i32, i32) {
    %c0_i32 = arith.constant 0 : i32
    %c0_i32_0 = arith.constant 0 : i32
    return %arg1, %c0_i32 : i32, i32
  }
  func.func @transform_2(%arg0: i32, %arg1: i32) -> (i32, i32) {
    %c0_i32 = arith.constant 0 : i32
    %c0_i32_0 = arith.constant 0 : i32
    return %c0_i32, %arg0 : i32, i32
  }
}

</mosaic_0001>

<bundles_post_ra>
// kernel: ce_loss_pallas.5
= control target key start
LH: loop header
LB: loop body
LE: loop exit
PB: predicated region body
PF: predicated region fallthrough
CT: control target
= control target key end

     0   :  { %v28_v0 = vlaneseq  ;;  %vm18_vm0 = vcmask 7168   ;;  %v175_v1 = vmov 0.0   ;;  %vm161_vm12 = vcmask 8192   ;;  %s232_s0 = inlined_call_operand.vmem [shape: s32[1,128], index: 0, kind: input, shape index: {}]   ;;  %s233_s2 = inlined_call_operand.vmem [shape: f32[1,128], index: 2, kind: input, shape index: {}]   ;;  %s234_s1 = inlined_call_operand.vmem [shape: f32[1,128], index: 1, kind: input, shape index: {}]   ;;  %s235_s3 = inlined_call_operand.vmem [shape: f32[1,2], index: 3, kind: output, shape index: {}]  }
   0x1   :  { %22 = vst.msk [vmem:[#allocation3] sm:$0xff] %vm18_vm0, %v175_v1  ;;  %19 = vst.msk [vmem:[#allocation2] sm:$0xff] %vm18_vm0, %v175_v1  ;;  %v167_v3 = vld [vmem:[%s232_s0] ss:$0 sm:$0xff] }
   0x2   :  { %20 = vst.msk [vmem:[#allocation2 + $0x8] sm:$0xff] %vm18_vm0, %v175_v1  ;;  %21 = vst.msk [vmem:[#allocation2 + $0x10] sm:$0xff] %vm18_vm0, %v175_v1  ;;  %v29_v2 = vshrl.u32 %v28_v0, 7  ;;  %v169_v10 = vld [vmem:[%s233_s2] ss:$0 sm:$0xff] }
   0x3   :  { %23 = vst.msk [vmem:[#allocation3 + $0x8] sm:$0xff] %vm18_vm0, %v175_v1  ;;  %24 = vst.msk [vmem:[#allocation3 + $0x10] sm:$0xff] %vm18_vm0, %v175_v1  ;;  %v168_v11 = vld [vmem:[%s234_s1] ss:$0 sm:$0xff] }
   0x4   :  { %v32_v4 = vmul.u32 4, %v29_v2  ;;  %v30_v5 = vadd.s32 8, %v29_v2  ;;  %v206_v6 = vadd.s32 16, %v29_v2 }
   0x6   :  { %vm39_vm1 = vcmp.ge.s32.totalorder %v167_v3, %v32_v4  ;;  %v42_v7 = vadd.s32 4, %v32_v4  ;;  %v33_v8 = vmul.u32 4, %v30_v5  ;;  %v34_v9 = vmul.u32 4, %v206_v6 }
   0x7   :  { %vm121_vm10 = vcmp.lt.s32.totalorder %v206_v6, 20 }
   0x8   :  { %vm45_vm2 = vcmp.lt.s32.totalorder %v167_v3, %v42_v7  ;;  %vm40_vm3 = vcmp.ge.s32.totalorder %v167_v3, %v33_v8  ;;  %v43_v12 = vadd.s32 4, %v33_v8  ;;  %v44_v13 = vadd.s32 4, %v34_v9  ;;  %v76_v20 = vld [vmem:[#allocation3] sm:$0xff]  ;;  %v51_v21 = vld [vmem:[#allocation2] sm:$0xff] }
   0x9   :  { %vm48_vm4 = vmand %vm39_vm1, %vm45_vm2  ;;  %vm41_vm6 = vcmp.ge.s32.totalorder %v167_v3, %v34_v9  ;;  %v52_v27 = vld [vmem:[#allocation2 + $0x8] sm:$0xff]  ;;  %v53_v33 = vld [vmem:[#allocation2 + $0x10] sm:$0xff] }
   0xa   :  { %v85_v14 = vsel %vm48_vm4, %v169_v10, 0.0  ;;  %v60_v15 = vsel %vm48_vm4, %v168_v11, 0.0  ;;  %vm46_vm5 = vcmp.lt.s32.totalorder %v167_v3, %v43_v12  ;;  %vm47_vm8 = vcmp.lt.s32.totalorder %v167_v3, %v44_v13  ;;  %v77_v26 = vld [vmem:[#allocation3 + $0x8] sm:$0xff]  ;;  %v78_v32 = vld [vmem:[#allocation3 + $0x10] sm:$0xff] }
   0xb   :  { %88 = vadd.xlane.f32.xlu1 %v85_v14  ;;  %63 = vadd.xlane.f32.xlu0 %v60_v15  ;;  %vm49_vm7 = vmand %vm40_vm3, %vm46_vm5  ;;  %v157_v15 = vand.u32 127, %v28_v0 }
   0xc   :  { %v86_v16 = vsel %vm49_vm7, %v169_v10, 0.0  ;;  %v61_v17 = vsel %vm49_vm7, %v168_v11, 0.0  ;;  %vm50_vm9 = vmand %vm41_vm6, %vm47_vm8 }
   0xd   :  { %v87_v18 = vsel %vm50_vm9, %v169_v10, 0.0  ;;  %v62_v19 = vsel %vm50_vm9, %v168_v11, 0.0  ;;  %vm158_vm11 = vcmp.eq.s32.totalorder %v157_v15, 0 }
   0xf   :  { %90 = vadd.xlane.f32.xlu1 %v86_v16  ;;  %65 = vadd.xlane.f32.xlu0 %v61_v17 }
  0x13   :  { %92 = vadd.xlane.f32.xlu1 %v87_v18  ;;  %67 = vadd.xlane.f32.xlu0 %v62_v19 }
  0x94   :  { %v89_v22 = vpop.xlane.xlu1 %88  ;;  %v64_v23 = vpop.xlane.xlu0 %63 }
  0x95   :  { %v94_v24 = vadd.f32 %v89_v22, %v76_v20  ;;  %v69_v25 = vadd.f32 %v64_v23, %v51_v21 }
  0x97   :  { %97 = vst.msk [vmem:[#allocation3] sm:$0xff] %vm18_vm0, %v94_v24  ;;  %73 = vst.msk [vmem:[#allocation2] sm:$0xff] %vm18_vm0, %v69_v25 }
  0x98   :  { %v91_v28 = vpop.xlane.xlu1 %90  ;;  %v66_v29 = vpop.xlane.xlu0 %65 }
  0x99   :  { %v95_v30 = vadd.f32 %v91_v28, %v77_v26  ;;  %v70_v31 = vadd.f32 %v66_v29, %v52_v27 }
  0x9b   :  { %98 = vst.msk [vmem:[#allocation3 + $0x8] sm:$0xff] %vm18_vm0, %v95_v30  ;;  %74 = vst.msk [vmem:[#allocation2 + $0x8] sm:$0xff] %vm18_vm0, %v70_v31 }
  0x9c   :  { %v93_v34 = vpop.xlane.xlu1 %92  ;;  %v68_v35 = vpop.xlane.xlu0 %67 }
  0x9d   :  { %v96_v36 = vadd.f32 %v93_v34, %v78_v32  ;;  %v71_v37 = vadd.f32 %v68_v35, %v53_v33 }
  0x9e   :  { %v103_v38 = vld [vmem:[#allocation2] sm:$0xff]  ;;  %v106_v39 = vld [vmem:[#allocation3] sm:$0xff] }
  0x9f   :  { %99 = vst.msk [vmem:[#allocation3 + $0x10] sm:$0xff] %vm18_vm0, %v96_v36  ;;  %75 = vst.msk [vmem:[#allocation2 + $0x10] sm:$0xff] %vm18_vm0, %v71_v37  ;;  %v109_v40 = vsub.f32 %v103_v38, %v106_v39 }
  0xa1   :  { %v112_v44 = vand.u32 2147483647, %v109_v40 }
  0xa2   :  { %v104_v41 = vld [vmem:[#allocation2 + $0x8] sm:$0xff]  ;;  %v107_v42 = vld [vmem:[#allocation3 + $0x8] sm:$0xff] }
  0xa3   :  { %v110_v43 = vsub.f32 %v104_v41, %v107_v42  ;;  %v116_v50 = vmul.f32 0.25, %v112_v44 }
  0xa5   :  { %v113_v45 = vand.u32 2147483647, %v110_v43  ;;  %v142_v55 = vsel %vm18_vm0, %v116_v50, -inf  ;;  %v125_v56 = vsel %vm18_vm0, %v116_v50, 0.0 }
  0xa6   :  { %v105_v46 = vld [vmem:[#allocation2 + $0x10] sm:$0xff]  ;;  %v108_v47 = vld [vmem:[#allocation3 + $0x10] sm:$0xff] }
  0xa7   :  { %v111_v48 = vsub.f32 %v105_v46, %v108_v47  ;;  %v117_v49 = vmul.f32 0.25, %v113_v45 }
  0xa9   :  { %v114_v51 = vand.u32 2147483647, %v111_v48  ;;  %v143_v52 = vsel %vm18_vm0, %v117_v49, -inf  ;;  %v126_v53 = vsel %vm18_vm0, %v117_v49, 0.0 }
  0xaa   :  { %v145_v58 = vmax.f32 %v142_v55, %v143_v52  ;;  %v127_v59 = vadd.f32 %v126_v53, %v125_v56 }
  0xab   :  { %v118_v54 = vmul.f32 0.25, %v114_v51 }
  0xad   :  { %v124_v57 = vsel %vm121_vm10, %v118_v54, 0.0 }
  0xae   :  { %v144_v60 = vsel %vm18_vm0, %v124_v57, -inf  ;;  %v128_v61 = vsel %vm18_vm0, %v124_v57, 0.0 }
  0xaf   :  { %v146_v62 = vmax.f32 %v145_v58, %v144_v60  ;;  %v129_v63 = vadd.f32 %v128_v61, %v127_v59 }
  0xb1   :  { %147 = vmax.xlane.f32.xlu1 %v146_v62  ;;  %130 = vadd.xlane.f32.xlu0 %v129_v63 }
 0x13a   :  { %v148_v1 = vpop.xlane.xlu1 %147  ;;  %v131_v2 = vpop.xlane.xlu0 %130 }
 0x13b   :  { %v149_v3 = vrot.slane %v148_v1, 4  ;;  %v132_v4 = vrot.slane %v131_v2, 4 }
 0x13d   :  { %v150_v5 = vmax.f32 %v148_v1, %v149_v3  ;;  %v133_v6 = vadd.f32 %v132_v4, %v131_v2 }
 0x13f   :  { %v151_v7 = vrot.slane %v150_v5, 2  ;;  %v134_v8 = vrot.slane %v133_v6, 2 }
 0x141   :  { %v152_v9 = vmax.f32 %v150_v5, %v151_v7  ;;  %v135_v10 = vadd.f32 %v134_v8, %v133_v6 }
 0x143   :  { %v136_v11 = vrot.slane %v135_v10, 1  ;;  %v153_v12 = vrot.slane %v152_v9, 1 }
 0x145   :  { %v137_v13 = vadd.f32 %v136_v11, %v135_v10  ;;  %v154_v14 = vmax.f32 %v152_v9, %v153_v12 }
 0x147   :  { %170 = vpush %v137_v13 }
 0x148   :  { %172 = vpush %v154_v14 }
 0x178   :  { %s171_s0 = spop %170 }
 0x179   :  { %v139_v16 = vstv %s171_s0  ;;  %s173_s1 = spop %172 }
 0x17a   :  { %v141_v17 = vmul.f32 0.05, %v139_v16  ;;  %v159_v18 = vstv %s173_s1 }
 0x17c   :  { %v160_v19 = vsel %vm158_vm11, %v141_v17, %v159_v18 }
 0x17d   :  { %162 = vst.msk [vmem:[%s235_s3] sm:$0x1] %vm161_vm12, %v160_v19 }

// kernel: ce_loss_pallas.3
= control target key start
LH: loop header
LB: loop body
LE: loop exit
PB: predicated region body
PF: predicated region fallthrough
CT: control target
= control target key end

     0   :  { %vm16_vm0 = vcmask 1041408   ;;  %v41_v5 = vlaneseq  ;;  %v89_v31 = vmov 0.0   ;;  %s130_s0 = inlined_call_operand.vmem [shape: f32[10,128], index: 0, kind: input, shape index: {}]   ;;  %s131_s1 = inlined_call_operand.vmem [shape: s32[1,128], index: 1, kind: input, shape index: {}]   ;;  %s132_s3 = inlined_call_operand.vmem [shape: f32[1,128], index: 3, kind: output, shape index: {1}]   ;;  %s133_s2 = inlined_call_operand.vmem [shape: f32[1,128], index: 2, kind: output, shape index: {0}]  }
   0x1   :  { %v13_v0 = vld [vmem:[%s130_s0] sm:$0xff]  ;;  %v14_v1 = vld [vmem:[%s130_s0 + $0x8] sm:$0x3] }
   0x2   :  { %v17_v2 = vsel %vm16_vm0, %v14_v1, -inf  ;;  %v42_v8 = vshrl.u32 %v41_v5, 7  ;;  %v65_v24 = vand.u32 127, %v41_v5  ;;  %v15_v27 = vld [vmem:[%s131_s1] sm:$0x1] }
   0x3   :  { %v18_v3 = vmax.f32 %v13_v0, %v17_v2 }
   0x4   :  { %v43_v11 = vadd.s32 8, %v42_v8  ;;  %vm68_vm7 = vcmp.lt.s32.totalorder %v65_v24, 80 }
   0x5   :  { %v19_v4 = vrot.slane %v18_v3, 4 }
   0x7   :  { %v20_v6 = vmax.f32 %v18_v3, %v19_v4 }
   0x9   :  { %v21_v7 = vrot.slane %v20_v6, 2 }
   0xb   :  { %v22_v9 = vmax.f32 %v20_v6, %v21_v7 }
   0xd   :  { %v23_v10 = vrot.slane %v22_v9, 1 }
   0xf   :  { %v24_v12 = vmax.f32 %v22_v9, %v23_v10 }
  0x11   :  { %v25_v13 = vsub.f32 %v13_v0, %v24_v12  ;;  %v26_v14 = vsub.f32 %v14_v1, %v24_v12  ;;  %vm44_vm1 = vcmp.eq.f32.partialorder %v13_v0, %v24_v12  ;;  %vm45_vm2 = vcmp.eq.f32.partialorder %v14_v1, %v24_v12 }
  0x12   :  { %v46_v15 = vsel %vm44_vm1, %v42_v8, 10  ;;  %v47_v16 = vsel %vm45_vm2, %v43_v11, 10 }
  0x13   :  { %v27_v17 = vmul.f32 1.442695, %v25_v13  ;;  %v29_v18 = vmul.f32 1.442695, %v26_v14  ;;  %v48_v19 = vsel %vm16_vm0, %v47_v16, 2147483647 }
  0x14   :  { %vm49_vm3 = vcmp.lt.s32.totalorder %v46_v15, %v48_v19 }
  0x15   :  { %83 = vpow2.f32 %v27_v17  ;;  %v50_v20 = vsel %vm49_vm3, %v46_v15, %v48_v19 }
  0x16   :  { %85 = vpow2.f32 %v29_v18  ;;  %v51_v21 = vrot.slane %v50_v20, 4 }
  0x18   :  { %vm52_vm4 = vcmp.lt.s32.totalorder %v50_v20, %v51_v21 }
  0x19   :  { %v53_v22 = vsel %vm52_vm4, %v50_v20, %v51_v21 }
  0x1a   :  { %v54_v23 = vrot.slane %v53_v22, 2 }
  0x1c   :  { %vm55_vm5 = vcmp.lt.s32.totalorder %v53_v22, %v54_v23 }
  0x1d   :  { %v56_v25 = vsel %vm55_vm5, %v53_v22, %v54_v23 }
  0x1e   :  { %v57_v26 = vrot.slane %v56_v25, 1 }
  0x20   :  { %vm58_vm6 = vcmp.lt.s32.totalorder %v56_v25, %v57_v26 }
  0x21   :  { %v59_v28 = vsel %vm58_vm6, %v56_v25, %v57_v26 }
  0x22   :  { %v84_v29 = vpop.eup %83  ;;  %vm60_vm8 = vcmp.eq.s32.totalorder %v59_v28, %v15_v27 }
  0x23   :  { %v86_v30 = vpop.eup %85  ;;  %v81_v32 = vsel %vm60_vm8, 1.0, %v89_v31 }
  0x24   :  { %v31_v33 = vsel %vm16_vm0, %v86_v30, 0.0  ;;  %v71_v34 = vsel %vm68_vm7, %v81_v32, 0.0 }
  0x25   :  { %v32_v35 = vadd.f32 %v84_v29, %v31_v33  ;;  %72 = vst [vmem:[%s132_s3] sm:$0x1] %v71_v34 }
  0x27   :  { %v33_v36 = vrot.slane %v32_v35, 4 }
  0x29   :  { %v34_v37 = vadd.f32 %v33_v36, %v32_v35 }
  0x2b   :  { %v35_v38 = vrot.slane %v34_v37, 2 }
  0x2d   :  { %v36_v39 = vadd.f32 %v35_v38, %v34_v37 }
  0x2f   :  { %v37_v40 = vrot.slane %v36_v39, 1 }
  0x31   :  { %v38_v41 = vadd.f32 %v37_v40, %v36_v39 }
  0x33   :  { %87 = vrcp.f32 %v38_v41 }
  0x40   :  { %v88_v42 = vpop.eup %87 }
  0x41   :  { %v69_v43 = vsel %vm68_vm7, %v88_v42, 2.0 }
  0x42   :  { %70 = vst [vmem:[%s133_s2] sm:$0x1] %v69_v43 }

// kernel: ce_loss_pallas.4
= control target key start
LH: loop header
LB: loop body
LE: loop exit
PB: predicated region body
PF: predicated region fallthrough
CT: control target
= control target key end

     0   :  { %v292_v0 = vmov 0   ;;  %v34_v17 = vlaneseq  ;;  %v570_v30 = vmov 0  ;;  %v574_v36 = vmov 0  ;;  %s567_s1 = inlined_call_operand.vmem [shape: f32[128,1], index: 1, kind: input, shape index: {}]   ;;  %s568_s0 = inlined_call_operand.vmem [shape: f32[1,128], index: 0, kind: input, shape index: {}]   ;;  %s569_s2 = inlined_call_operand.vmem [shape: s32[1,128], index: 2, kind: output, shape index: {}]  }
   0x1   :  { %291 = vset.pattern.permute.xlu1 %v292_v0  ;;  %15 = vst [vmem:[#allocation2] sm:$0x1] %v292_v0  ;;  %290 = vset.pattern.permute.xlu0 %v292_v0  ;;  %v19_v1 = vld [vmem:[%s567_s1 + $0x10] sm:$0xff]  ;;  %v17_v2 = vld [vmem:[%s567_s1] sm:$0xff]  ;;  %v20_v3 = vld [vmem:[%s567_s1 + $0x18] sm:$0xff]  ;;  %v580_v43 = vmov 0 }
   0x2   :  { %85 = vperm.xlu1 %291, %v19_v1   ;;  %75 = vperm.xlu0 %290, %v17_v2   ;;  %v18_v4 = vld [vmem:[%s567_s1 + $0x8] sm:$0xff]  ;;  %v21_v6 = vld [vmem:[%s567_s1 + $0x20] sm:$0xff]  ;;  %v24_v7 = vld [vmem:[%s567_s1 + $0x38] sm:$0xff]  ;;  %v359_v18 = vshrl.u32 %v34_v17, 7  ;;  %v361_v19 = vand.u32 127, %v34_v17  ;;  %v589_v48 = vmov 0 }
   0x3   :  { %v22_v5 = vld [vmem:[%s567_s1 + $0x28] sm:$0xff]  ;;  %v23_v8 = vld [vmem:[%s567_s1 + $0x30] sm:$0xff]  ;;  %v25_v10 = vld [vmem:[%s567_s1 + $0x40] sm:$0xff]  ;;  %v592_v49 = vmov 0  ;;  %v597_v54 = vmov 0  ;;  %v599_v60 = vmov 0 }
   0x4   :  { %v26_v9 = vld [vmem:[%s567_s1 + $0x48] sm:$0xff]  ;;  %v28_v11 = vld [vmem:[%s567_s1 + $0x58] sm:$0xff]  ;;  %v27_v12 = vld [vmem:[%s567_s1 + $0x50] sm:$0xff]  ;;  %v42_v20 = vadd.s32 16, %v359_v18  ;;  %v43_v24 = vadd.s32 24, %v359_v18  ;;  %v45_v25 = vadd.s32 40, %v359_v18  ;;  %vm191_vm2 = vcmp.lt.s32.totalorder %v359_v18, %v361_v19 }
   0x5   :  { %v30_v13 = vld [vmem:[%s567_s1 + $0x68] sm:$0xff]  ;;  %v29_v14 = vld [vmem:[%s567_s1 + $0x60] sm:$0xff]  ;;  %v32_v15 = vld [vmem:[%s567_s1 + $0x78] sm:$0xff]  ;;  %v41_v27 = vadd.s32 8, %v359_v18  ;;  %v44_v29 = vadd.s32 32, %v359_v18  ;;  %v47_v31 = vadd.s32 56, %v359_v18 }
   0x6   :  { %90 = vperm.xlu1 %291, %v20_v3   ;;  %80 = vperm.xlu0 %290, %v18_v4   ;;  %v31_v16 = vld [vmem:[%s567_s1 + $0x70] sm:$0xff]  ;;  %v367_v23 = vld [vmem:[%s568_s0] ss:$0 sm:$0xff]  ;;  %vm193_vm0 = vcmp.lt.s32.totalorder %v42_v20, %v361_v19  ;;  %vm194_vm4 = vcmp.lt.s32.totalorder %v43_v24, %v361_v19  ;;  %vm196_vm7 = vcmp.lt.s32.totalorder %v45_v25, %v361_v19  ;;  %v46_v35 = vadd.s32 48, %v359_v18 }
   0x7   :  { %vm192_vm9 = vcmp.lt.s32.totalorder %v41_v27, %v361_v19  ;;  %vm195_vm13 = vcmp.lt.s32.totalorder %v44_v29, %v361_v19  ;;  %v49_v38 = vadd.s32 72, %v359_v18  ;;  %v48_v41 = vadd.s32 64, %v359_v18 }
   0x8   :  { %v51_v47 = vadd.s32 88, %v359_v18  ;;  %v50_v53 = vadd.s32 80, %v359_v18  ;;  %v53_v55 = vadd.s32 104, %v359_v18  ;;  %v52_v58 = vadd.s32 96, %v359_v18  ;;  %v223_v42 = vld [vmem:[#allocation2] sm:$0x1] }
   0x9   :  { %v55_v59 = vadd.s32 120, %v359_v18  ;;  %v54_v61 = vadd.s32 112, %v359_v18 }
   0xa   :  { %100 = vperm.xlu1 %291, %v22_v5   ;;  %95 = vperm.xlu0 %290, %v21_v6  }
   0xe   :  { %110 = vperm.xlu1 %291, %v24_v7   ;;  %105 = vperm.xlu0 %290, %v23_v8  }
  0x12   :  { %120 = vperm.xlu1 %291, %v26_v9   ;;  %115 = vperm.xlu0 %290, %v25_v10  }
  0x16   :  { %130 = vperm.xlu1 %291, %v28_v11   ;;  %125 = vperm.xlu0 %290, %v27_v12  }
  0x1a   :  { %140 = vperm.xlu1 %291, %v30_v13   ;;  %135 = vperm.xlu0 %290, %v29_v14  }
  0x1e   :  { %150 = vperm.xlu1 %291, %v32_v15   ;;  %145 = vperm.xlu0 %290, %v31_v16  }
  0x7d   :  { %v86_v21 = vpop.permute.xlu1 %85  ;;  %v76_v22 = vpop.permute.xlu0 %75 }
  0x7e   :  { %vm177_vm1 = vcmp.eq.f32.partialorder %v86_v21, %v367_v23  ;;  %vm175_vm3 = vcmp.eq.f32.partialorder %v76_v22, %v367_v23 }
  0x7f   :  { %vm380_vm6 = vmand %vm177_vm1, %vm193_vm0 }
  0x80   :  { %v571_v30 = vsel %vm380_vm6, 4294967295, %v570_v30  ;;  %vm386_vm8 = vmand %vm175_vm3, %vm191_vm2  ;;  %vm159_vm2 = vcmp.lt.f32.partialorder %v76_v22, %v367_v23 }
  0x81   :  { %v91_v26 = vpop.permute.xlu1 %90  ;;  %v81_v28 = vpop.permute.xlu0 %80  ;;  %vm430_vm6 = vmor %vm159_vm2, %vm386_vm8  ;;  %vm200_vm8 = vcmp.lt.s32.totalorder %v49_v38, %v361_v19  ;;  %vm588_vm2 = vnez %v571_v30 }
  0x82   :  { %vm178_vm5 = vcmp.eq.f32.partialorder %v91_v26, %v367_v23  ;;  %vm176_vm10 = vcmp.eq.f32.partialorder %v81_v28, %v367_v23  ;;  %v240_v4 = vsel %vm430_vm6, 1, %v292_v0 }
  0x83   :  { %vm393_vm11 = vmand %vm178_vm5, %vm194_vm4  ;;  %vm198_vm4 = vcmp.lt.s32.totalorder %v47_v31, %v361_v19  ;;  %vm160_vm5 = vcmp.lt.f32.partialorder %v81_v28, %v367_v23 }
  0x84   :  { %v575_v36 = vsel %vm393_vm11, 4294967295, %v574_v36  ;;  %vm403_vm3 = vmand %vm176_vm10, %vm192_vm9  ;;  %vm162_vm9 = vcmp.lt.f32.partialorder %v91_v26, %v367_v23 }
  0x85   :  { %v101_v33 = vpop.permute.xlu1 %100  ;;  %v96_v34 = vpop.permute.xlu0 %95 }
  0x86   :  { %vm180_vm12 = vcmp.eq.f32.partialorder %v101_v33, %v367_v23  ;;  %vm179_vm14 = vcmp.eq.f32.partialorder %v96_v34, %v367_v23  ;;  %vm164_vm15 = vcmp.lt.f32.partialorder %v101_v33, %v367_v23  ;;  %vm163_vm1 = vcmp.lt.f32.partialorder %v96_v34, %v367_v23 }
  0x87   :  { %vm212_vm0 = vmand %vm180_vm12, %vm196_vm7  ;;  %vm161_vm7 = vcmp.lt.f32.partialorder %v86_v21, %v367_v23 }
  0x88   :  { %vm211_vm11 = vmand %vm179_vm14, %vm195_vm13 }
  0x89   :  { %v111_v39 = vpop.permute.xlu1 %110  ;;  %v106_v40 = vpop.permute.xlu0 %105  ;;  %vm416_vm10 = vmor %vm164_vm15, %vm212_vm0 }
  0x8a   :  { %vm420_vm12 = vmor %vm163_vm1, %vm211_vm11  ;;  %vm166_vm13 = vcmp.lt.f32.partialorder %v111_v39, %v367_v23  ;;  %vm182_vm14 = vcmp.eq.f32.partialorder %v111_v39, %v367_v23  ;;  %vm165_vm11 = vcmp.lt.f32.partialorder %v106_v40, %v367_v23  ;;  %vm181_vm0 = vcmp.eq.f32.partialorder %v106_v40, %v367_v23 }
  0x8b   :  { %v581_v43 = vsel %vm420_vm12, 4294967295, %v580_v43  ;;  %vm214_vm15 = vmand %vm182_vm14, %vm198_vm4  ;;  %vm591_vm14 = vnez %v575_v36  ;;  %v245_v63 = vsel %vm416_vm10, 1, %v292_v0 }
  0x8c   :  { %vm442_vm1 = vmor %vm160_vm5, %vm403_vm3  ;;  %vm594_vm5 = vcmp.lt.s32.totalorder %v46_v35, %v361_v19 }
  0x8d   :  { %vm446_vm12 = vmor %vm166_vm13, %vm214_vm15  ;;  %v121_v50 = vpop.permute.xlu1 %120  ;;  %v116_v51 = vpop.permute.xlu0 %115  ;;  %v241_v6 = vsel %vm442_vm1, 1, %v292_v0 }
  0x8e   :  { %vm454_vm4 = vmor %vm161_vm7, %vm588_vm2  ;;  %vm168_vm7 = vcmp.lt.f32.partialorder %v121_v50, %v367_v23  ;;  %vm184_vm2 = vcmp.eq.f32.partialorder %v121_v50, %v367_v23  ;;  %v247_v7 = vsel %vm446_vm12, 1, %v292_v0  ;;  %v257_v10 = vadd.s32 %v245_v63, %v241_v6 }
  0x8f   :  { %v590_v48 = vsel %vm454_vm4, 4294967295, %v589_v48  ;;  %vm460_vm3 = vmor %vm162_vm9, %vm591_vm14  ;;  %vm199_vm4 = vcmp.lt.s32.totalorder %v48_v41, %v361_v19  ;;  %vm167_vm14 = vcmp.lt.f32.partialorder %v116_v51, %v367_v23 }
  0x90   :  { %v593_v49 = vsel %vm460_vm3, 4294967295, %v592_v49  ;;  %vm213_vm13 = vmand %vm181_vm0, %vm594_vm5  ;;  %vm183_vm3 = vcmp.eq.f32.partialorder %v116_v51, %v367_v23 }
  0x91   :  { %vm466_vm15 = vmor %vm165_vm11, %vm213_vm13  ;;  %vm202_vm11 = vcmp.lt.s32.totalorder %v51_v47, %v361_v19  ;;  %v131_v56 = vpop.permute.xlu1 %130  ;;  %v126_v57 = vpop.permute.xlu0 %125 }
  0x92   :  { %vm216_vm9 = vmand %vm184_vm2, %vm200_vm8  ;;  %vm170_vm13 = vcmp.lt.f32.partialorder %v131_v56, %v367_v23  ;;  %vm201_vm2 = vcmp.lt.s32.totalorder %v50_v53, %v361_v19  ;;  %v246_v12 = vsel %vm466_vm15, 1, %v292_v0 }
  0x93   :  { %vm476_vm0 = vmor %vm168_vm7, %vm216_vm9  ;;  %vm186_vm7 = vcmp.eq.f32.partialorder %v131_v56, %v367_v23 }
  0x94   :  { %v598_v54 = vsel %vm476_vm0, 4294967295, %v597_v54  ;;  %vm215_vm5 = vmand %vm183_vm3, %vm199_vm4  ;;  %vm169_vm4 = vcmp.lt.f32.partialorder %v126_v57, %v367_v23  ;;  %vm185_vm3 = vcmp.eq.f32.partialorder %v126_v57, %v367_v23 }
  0x95   :  { %vm484_vm8 = vmor %vm167_vm14, %vm215_vm5  ;;  %vm204_vm14 = vcmp.lt.s32.totalorder %v53_v55, %v361_v19  ;;  %vm603_vm5 = vnez %v581_v43  ;;  %v141_v2 = vpop.permute.xlu1 %140  ;;  %v136_v3 = vpop.permute.xlu0 %135  ;;  %vm608_vm12 = vnez %v598_v54 }
  0x96   :  { %v600_v60 = vsel %vm484_vm8, 4294967295, %v599_v60  ;;  %vm218_vm9 = vmand %vm186_vm7, %vm202_vm11  ;;  %v244_v1 = vsel %vm603_vm5, 1, %v292_v0  ;;  %vm203_vm11 = vcmp.lt.s32.totalorder %v52_v58, %v361_v19  ;;  %vm172_vm10 = vcmp.lt.f32.partialorder %v141_v2, %v367_v23 }
  0x97   :  { %vm494_vm0 = vmor %vm170_vm13, %vm218_vm9  ;;  %vm206_vm13 = vcmp.lt.s32.totalorder %v55_v59, %v361_v19  ;;  %vm188_vm9 = vcmp.eq.f32.partialorder %v141_v2, %v367_v23  ;;  %vm607_vm5 = vnez %v593_v49  ;;  %v256_v11 = vadd.s32 %v244_v1, %v240_v4 }
  0x98   :  { %vm217_vm8 = vmand %vm185_vm3, %vm201_vm2  ;;  %vm205_vm2 = vcmp.lt.s32.totalorder %v54_v61, %v361_v19  ;;  %vm606_vm3 = vnez %v590_v48  ;;  %v243_v9 = vsel %vm607_vm5, 1, %v292_v0  ;;  %v249_v13 = vsel %vm608_vm12, 1, %v292_v0 }
  0x99   :  { %vm510_vm7 = vmor %vm169_vm4, %vm217_vm8  ;;  %vm171_vm8 = vcmp.lt.f32.partialorder %v136_v3, %v367_v23  ;;  %vm187_vm4 = vcmp.eq.f32.partialorder %v136_v3, %v367_v23  ;;  %v242_v8 = vsel %vm606_vm3, 1, %v292_v0  ;;  %v251_v15 = vsel %vm494_vm0, 1, %v292_v0  ;;  %v151_v16 = vpop.permute.xlu1 %150  ;;  %v146_v17 = vpop.permute.xlu0 %145 }
  0x9a   :  { %vm220_vm6 = vmand %vm188_vm9, %vm204_vm14  ;;  %vm609_vm14 = vnez %v600_v60  ;;  %v259_v18 = vadd.s32 %v247_v7, %v243_v9  ;;  %v250_v20 = vsel %vm510_vm7, 1, %v292_v0  ;;  %v258_v24 = vadd.s32 %v246_v12, %v242_v8 }
  0x9b   :  { %vm237_vm1 = vmor %vm172_vm10, %vm220_vm6  ;;  %v248_v14 = vsel %vm609_vm14, 1, %v292_v0  ;;  %vm174_vm10 = vcmp.lt.f32.partialorder %v151_v16, %v367_v23  ;;  %vm190_vm6 = vcmp.eq.f32.partialorder %v151_v16, %v367_v23  ;;  %v261_v25 = vadd.s32 %v257_v10, %v249_v13 }
  0x9c   :  { %vm219_vm9 = vmand %vm187_vm4, %vm203_vm11  ;;  %v253_v21 = vsel %vm237_vm1, 1, %v292_v0  ;;  %vm173_vm11 = vcmp.lt.f32.partialorder %v146_v17, %v367_v23  ;;  %vm189_vm4 = vcmp.eq.f32.partialorder %v146_v17, %v367_v23  ;;  %v260_v26 = vadd.s32 %v256_v11, %v248_v14 }
  0x9d   :  { %vm236_vm15 = vmor %vm171_vm8, %vm219_vm9  ;;  %v263_v27 = vadd.s32 %v259_v18, %v251_v15  ;;  %v262_v29 = vadd.s32 %v258_v24, %v250_v20  ;;  %v265_v30 = vadd.s32 %v261_v25, %v253_v21 }
  0x9e   :  { %v252_v22 = vsel %vm236_vm15, 1, %v292_v0  ;;  %vm222_vm0 = vmand %vm190_vm6, %vm206_vm13 }
  0x9f   :  { %vm239_vm7 = vmor %vm174_vm10, %vm222_vm0  ;;  %v264_v31 = vadd.s32 %v260_v26, %v252_v22 }
  0xa0   :  { %v255_v28 = vsel %vm239_vm7, 1, %v292_v0  ;;  %vm221_vm8 = vmand %vm189_vm4, %vm205_vm2 }
  0xa1   :  { %v267_v32 = vadd.s32 %v263_v27, %v255_v28  ;;  %vm238_vm3 = vmor %vm173_vm11, %vm221_vm8  ;;  %v268_v35 = vadd.s32 %v265_v30, %v264_v31 }
  0xa2   :  { %v254_v33 = vsel %vm238_vm3, 1, %v292_v0 }
  0xa3   :  { %v266_v34 = vadd.s32 %v262_v29, %v254_v33 }
  0xa5   :  { %v269_v23 = vadd.s32 %v267_v32, %v266_v34 }
  0xa7   :  { %v270_v36 = vadd.s32 %v269_v23, %v268_v35 }
  0xa9   :  { %v271_v37 = vrot.slane %v270_v36, 4 }
  0xab   :  { %v272_v38 = vadd.s32 %v271_v37, %v270_v36 }
  0xad   :  { %v273_v39 = vrot.slane %v272_v38, 2 }
  0xaf   :  { %v274_v40 = vadd.s32 %v273_v39, %v272_v38 }
  0xb1   :  { %v275_v41 = vrot.slane %v274_v40, 1 }
  0xb3   :  { %v276_v43 = vadd.s32 %v275_v41, %v274_v40 }
  0xb5   :  { %v277_v19 = vadd.s32 %v276_v43, %v223_v42 }
  0xb7   :  { %278 = vst [vmem:[#allocation2] sm:$0x1] %v277_v19 }
  0xbe   :  { %v282_v44 = vld [vmem:[#allocation2] sm:$0x1] }
  0xbf   :  { %283 = vst [vmem:[%s569_s2] sm:$0x1] %v282_v44 }

</bundles_post_ra>
